<compile_context>
chip_gen: v5e
topology: v5e:2x2
jax: 0.10.0
libtpu: 0.0.40
codegen_flags: <defaults>
</compile_context>

<pallas_src>
import math

import jax
import jax.numpy as jnp
from jax.experimental import pallas as pl
from jax.experimental.pallas import tpu as pltpu


def _round_up(x, m):
    return ((x + m - 1) // m) * m


# ---------------------------------------------------------------------------
# Fast path: weight & bias VMEM-resident, grid over M only.
# ---------------------------------------------------------------------------
def _fc_resident_kernel(x_ref, w_ref, b_ref, o_ref):
    # One (tm, N) output slab per grid step: single MXU matmul + bias add.
    o_ref[...] = (
        jnp.dot(x_ref[...], w_ref[...], preferred_element_type=jnp.float32)
        + b_ref[...]
    ).astype(o_ref.dtype)


# ---------------------------------------------------------------------------
# General fallback: K/N-tiled, accumulate directly into the resident output
# block; bias is folded into the k == 0 initialization (no epilogue branch).
# ---------------------------------------------------------------------------
def _fc_tiled_kernel(x_ref, w_ref, b_ref, o_ref):
    k = pl.program_id(2)

    @pl.when(k == 0)
    def _():
        o_ref[...] = jnp.broadcast_to(b_ref[...], o_ref.shape).astype(o_ref.dtype)

    # Output dtype is f32 here, so accumulating into o_ref loses no precision.
    o_ref[...] += jnp.dot(
        x_ref[...], w_ref[...], preferred_element_type=jnp.float32
    ).astype(o_ref.dtype)


def dense_fully_connected(
    features,
    weight,
    bias,
    *,
    tm=512,
    tn=256,
    tk=512,
    weight_resident_bytes=8 * 1024 * 1024,
):
    """features: (M, K), weight: (K, N), bias: (N,) -> (M, N)."""
    M, K = features.shape
    K2, N = weight.shape
    assert K == K2 and bias.shape == (N,)
    out_dtype = features.dtype

    # Clamp M tile so tiny graphs don't pad all the way to `tm` rows; keep it a
    # multiple of 8 (sublane alignment).
    tm = min(tm, _round_up(max(M, 1), 8))
    Mp = _round_up(M, tm)
    if Mp != M:
        features = jnp.pad(features, ((0, Mp - M), (0, 0)))

    bias2d = bias.reshape(1, N)  # 2-D view so the kernel sees a lane-dense tile

    if weight.size * weight.dtype.itemsize <= weight_resident_bytes:
        # ---- resident-weight path: single pass over M ----
        out = pl.pallas_call(
            _fc_resident_kernel,
            out_shape=jax.ShapeDtypeStruct((Mp, N), out_dtype),
            grid_spec=pltpu.PrefetchScalarGridSpec(
                num_scalar_prefetch=0,
                grid=(Mp // tm,),
                in_specs=[
                    pl.BlockSpec((tm, K), lambda i: (i, 0)),  # features stream
                    pl.BlockSpec((K, N), lambda i: (0, 0)),   # resident weight
                    pl.BlockSpec((1, N), lambda i: (0, 0)),   # resident bias
                ],
                out_specs=pl.BlockSpec((tm, N), lambda i: (i, 0)),
            ),
            compiler_params=pltpu.CompilerParams(
                dimension_semantics=("parallel",)
            ),
        )(features, weight, bias2d)
        return out[:M]

    # ---- general K/N-tiled fallback for very large weights ----
    # TODO(synk): if out_dtype were ever sub-f32, reintroduce an f32 accumulator.
    tm = min(256, tm)
    Mp = _round_up(M, tm)
    if Mp != features.shape[0]:
        features = jnp.pad(features, ((0, Mp - features.shape[0]), (0, 0)))
    tn = min(tn, _round_up(N, 128))
    tk = min(tk, _round_up(K, 128))
    Np = _round_up(N, tn)
    Kp = _round_up(K, tk)
    if Kp != K:
        features = jnp.pad(features, ((0, 0), (0, Kp - K)))
        weight = jnp.pad(weight, ((0, Kp - K), (0, 0)))
    if Np != N:
        weight = jnp.pad(weight, ((0, 0), (0, Np - N)))
        bias2d = jnp.pad(bias2d, ((0, 0), (0, Np - N)))

    out = pl.pallas_call(
        _fc_tiled_kernel,
        out_shape=jax.ShapeDtypeStruct((Mp, Np), out_dtype),
        grid_spec=pltpu.PrefetchScalarGridSpec(
            num_scalar_prefetch=0,
            grid=(Mp // tm, Np // tn, Kp // tk),
            in_specs=[
                pl.BlockSpec((tm, tk), lambda i, j, k: (i, k)),
                pl.BlockSpec((tk, tn), lambda i, j, k: (k, j)),
                pl.BlockSpec((1, tn), lambda i, j, k: (0, j)),
            ],
            out_specs=pl.BlockSpec((tm, tn), lambda i, j, k: (i, j)),
        ),
        compiler_params=pltpu.CompilerParams(
            dimension_semantics=("parallel", "parallel", "arbitrary")
        ),
    )(features, weight, bias2d)
    return out[:M, :N]


def init_params(key, in_channels, out_channels):
    """Deterministic init matching torch: xavier_uniform_ weight, uniform bias."""
    kw, kb = jax.random.split(key)
    a = math.sqrt(6.0 / (in_channels + out_channels))  # xavier_uniform_
    weight = jax.random.uniform(
        kw, (in_channels, out_channels), jnp.float32, minval=-a, maxval=a
    )
    stdv = 1.0 / math.sqrt(out_channels)  # uniform(out_channels, bias)
    bias = jax.random.uniform(
        kb, (out_channels,), jnp.float32, minval=-stdv, maxval=stdv
    )
    return weight, bias


if __name__ == "__main__":
    key = jax.random.PRNGKey(0)
    k_feat, k_param = jax.random.split(key)

    num_nodes = 201      # M (deliberately ragged to exercise padding/slicing)
    in_channels = 256    # K
    out_channels = 128   # N

    features = jax.random.normal(k_feat, (num_nodes, in_channels), jnp.float32)
    weight, bias = init_params(k_param, in_channels, out_channels)

    out = dense_fully_connected(features, weight, bias)
    out = jax.block_until_ready(out)

    # correctness check against plain JAX reference
    ref = features @ weight + bias
    assert out.shape == (num_nodes, out_channels)
    assert jnp.allclose(out, ref, atol=1e-4, rtol=1e-4)

    print("KERNEL_OK")
</pallas_src>

<mosaic_0001>
module attributes {stable_mosaic.version = 11 : i64} {
  func.func @_fc_resident_kernel(%arg0: i32, %arg1: memref<208x256xf32, #tpu.memory_space<vmem>>, %arg2: memref<256x128xf32, #tpu.memory_space<vmem>>, %arg3: memref<1x128xf32, #tpu.memory_space<vmem>>, %arg4: memref<208x128xf32, #tpu.memory_space<vmem>>) attributes {dimension_semantics = [#tpu.dimension_semantics<parallel>], iteration_bounds = array<i64: 1>, scalar_prefetch = 0 : i64, scratch_operands = 0 : i64, tpu.core_type = #tpu.core_type<tc>, window_params = [{transform_indices = @transform_0, window_bounds = array<i64: 208, 256>}, {pipeline_mode = #tpu.pipeline_mode<synchronous>, transform_indices = @transform_1, window_bounds = array<i64: 256, 128>}, {pipeline_mode = #tpu.pipeline_mode<synchronous>, transform_indices = @transform_2, window_bounds = array<i64: 1, 128>}, {transform_indices = @transform_3, window_bounds = array<i64: 208, 128>}]} {
    %c0 = arith.constant 0 : index
    %c0_0 = arith.constant 0 : index
    %0 = vector.load %arg1[%c0, %c0_0] : memref<208x256xf32, #tpu.memory_space<vmem>>, vector<208x256xf32>
    %c0_1 = arith.constant 0 : index
    %c0_2 = arith.constant 0 : index
    %1 = vector.load %arg2[%c0_1, %c0_2] : memref<256x128xf32, #tpu.memory_space<vmem>>, vector<256x128xf32>
    %cst = arith.constant dense<0.000000e+00> : vector<208x128xf32>
    %2 = tpu.matmul %0, %1, %cst {dimension_numbers = #tpu.dot_dimension_numbers<[1], [0], [0], [1], [0, 0, 1, 1], [], []>} : vector<208x256xf32>, vector<256x128xf32>, vector<208x128xf32> -> vector<208x128xf32>
    %c0_3 = arith.constant 0 : index
    %c0_4 = arith.constant 0 : index
    %3 = vector.load %arg3[%c0_3, %c0_4] : memref<1x128xf32, #tpu.memory_space<vmem>>, vector<1x128xf32>
    %4 = vector.broadcast %3 : vector<1x128xf32> to vector<208x128xf32>
    %5 = arith.addf %2, %4 : vector<208x128xf32>
    %c0_5 = arith.constant 0 : index
    %c0_6 = arith.constant 0 : index
    %6 = vector.load %arg4[%c0_5, %c0_6] : memref<208x128xf32, #tpu.memory_space<vmem>>, vector<208x128xf32>
    tpu.vector_store %arg4[%c0_5, %c0_6], %5 {strides = array<i32>} : memref<208x128xf32, #tpu.memory_space<vmem>>, vector<208x128xf32>,
    return
  }
  func.func @transform_0(%arg0: i32) -> (i32, i32) {
    %c0_i32 = arith.constant 0 : i32
    %c0_i32_0 = arith.constant 0 : i32
    return %arg0, %c0_i32 : i32, i32
  }
  func.func @transform_1(%arg0: i32) -> (i32, i32) {
    %c0_i32 = arith.constant 0 : i32
    %c0_i32_0 = arith.constant 0 : i32
    %c0_i32_1 = arith.constant 0 : i32
    return %c0_i32, %c0_i32_0 : i32, i32
  }
  func.func @transform_2(%arg0: i32) -> (i32, i32) {
    %c0_i32 = arith.constant 0 : i32
    %c0_i32_0 = arith.constant 0 : i32
    %c0_i32_1 = arith.constant 0 : i32
    return %c0_i32, %c0_i32_0 : i32, i32
  }
  func.func @transform_3(%arg0: i32) -> (i32, i32) {
    %c0_i32 = arith.constant 0 : i32
    %c0_i32_0 = arith.constant 0 : i32
    return %arg0, %c0_i32 : i32, i32
  }
}

</mosaic_0001>

<bundles_post_ra>
// kernel: tpu_custom_call.1
= control target key start
LH: loop header
LB: loop body
LE: loop exit
PB: predicated region body
PF: predicated region fallthrough
CT: control target
= control target key end

     0   :  { %8 = vsyncpa [#allocation3], 0  ;;  %s562_s0 = inlined_call_operand.hbm [shape: f32[208,256], index: 0, kind: input, shape index: {}]   ;;  %s563_s1 = inlined_call_operand.hbm [shape: f32[256,128], index: 1, kind: input, shape index: {}]   ;;  %s564_s2 = inlined_call_operand.vmem [shape: f32[1,128], index: 2, kind: input, shape index: {}]   ;;  %s565_s3 = inlined_call_operand.hbm [shape: f32[208,128], index: 3, kind: output, shape index: {}]  }
   0x1   :  { %9 = vsyncpa [#allocation6], 0 }
   0x2   :  { %10 = vsyncpa [#allocation4], 0  ;;  %s15_s14 = sshll.u32 %s562_s0, 4  ;;  %s489_s15 = smov [#allocation2]   ;;  %s16_s14 = int_to_ptr.hbm [resolvable:$true] %s15_s14 }
   0x3   :  { %s17_s16 = sshll.u32 %s489_s15, 4  ;;  %s28_s19 = sshll.u32 %s563_s1, 4  ;;  %s18_s16 = int_to_ptr.vmem [resolvable:$true] %s17_s16  ;;  %s29_s19 = int_to_ptr.hbm [resolvable:$true] %s28_s19 }
   0x4   :  { %s490_s20 = smov 256   ;;  %s491_s21 = smov 16  }
   0x5   :  { %23 = dma.hbm_to_vmem [thread:$0]  %s16_s14, 6656, %s18_s16, [#allocation3], %s490_s20, %s490_s20, %s491_s21  }
   0x6   :  { %s492_s22 = smov [#allocation5]   ;;  %s493_s24 = smov 128  }
   0x7   :  { %s30_s23 = sshll.u32 %s492_s22, 4  ;;  %s494_s25 = smov 8   ;;  %s31_s23 = int_to_ptr.vmem [resolvable:$true] %s30_s23 }
   0x8   :  { %36 = dma.hbm_to_vmem [thread:$0]  %s29_s19, 4096, %s31_s23, [#allocation6], %s493_s24, %s493_s24, %s494_s25  }
   0x9   :  { %483 = dma.done.wait [#allocation3], 6656  }
   0xa   :  { %484 = vsyncadd [#allocation3], 4294960640 }
   0xb   :  { %485 = dma.done.wait [#allocation6], 4096  }
   0xc   :  { %486 = vsyncadd [#allocation6], 4294963200  ;;  %v114_v0 = vld [vmem:[#allocation5 + $0x78] sm:$0xff]  ;;  %v113_v1 = vld [vmem:[#allocation5 + $0x70] sm:$0xff]  ;;  %s357_s29 = sshll.u32 %s565_s3, 4  ;;  %s358_s29 = int_to_ptr.hbm [resolvable:$true] %s357_s29 }
   0xd   :  { %v130_v2 = vld [vmem:[#allocation5 + $0xf8] sm:$0xff]  ;;  %371 = vmatpush.msra.mxu2 %v114_v0  ;;  %v129_v3 = vld [vmem:[#allocation5 + $0xf0] sm:$0xff]  ;;  %v112_v4 = vld [vmem:[#allocation5 + $0x68] sm:$0xff]  ;;  %135 = vmatpush.msra.mxu0 %v114_v0 }
   0xe   :  { %387 = vmatpush.msra.mxu3 %v130_v2  ;;  %v128_v5 = vld [vmem:[#allocation5 + $0xe8] sm:$0xff]  ;;  %230 = vmatpush.msra.mxu1 %v130_v2  ;;  %v111_v6 = vld [vmem:[#allocation5 + $0x60] sm:$0xff]  ;;  %v110_v8 = vld [vmem:[#allocation5 + $0x58] sm:$0xff] }
   0xf   :  { %372 = vmatpush.msra.mxu2 %v113_v1  ;;  %136 = vmatpush.msra.mxu0 %v113_v1  ;;  %v127_v7 = vld [vmem:[#allocation5 + $0xe0] sm:$0xff]  ;;  %v126_v9 = vld [vmem:[#allocation5 + $0xd8] sm:$0xff]  ;;  %v109_v10 = vld [vmem:[#allocation5 + $0x50] sm:$0xff] }
  0x10   :  { %388 = vmatpush.msra.mxu3 %v129_v3  ;;  %231 = vmatpush.msra.mxu1 %v129_v3  ;;  %v125_v11 = vld [vmem:[#allocation5 + $0xd0] sm:$0xff]  ;;  %v108_v12 = vld [vmem:[#allocation5 + $0x48] sm:$0xff]  ;;  %v107_v14 = vld [vmem:[#allocation5 + $0x40] sm:$0xff] }
  0x11   :  { %373 = vmatpush.msra.mxu2 %v112_v4  ;;  %137 = vmatpush.msra.mxu0 %v112_v4  ;;  %v124_v13 = vld [vmem:[#allocation5 + $0xc8] sm:$0xff]  ;;  %v123_v15 = vld [vmem:[#allocation5 + $0xc0] sm:$0xff]  ;;  %v106_v16 = vld [vmem:[#allocation5 + $0x38] sm:$0xff] }
  0x12   :  { %389 = vmatpush.msra.mxu3 %v128_v5  ;;  %232 = vmatpush.msra.mxu1 %v128_v5  ;;  %v122_v17 = vld [vmem:[#allocation5 + $0xb8] sm:$0xff]  ;;  %v105_v18 = vld [vmem:[#allocation5 + $0x30] sm:$0xff]  ;;  %v104_v20 = vld [vmem:[#allocation5 + $0x28] sm:$0xff] }
  0x13   :  { %374 = vmatpush.msra.mxu2 %v111_v6  ;;  %138 = vmatpush.msra.mxu0 %v111_v6  ;;  %v121_v19 = vld [vmem:[#allocation5 + $0xb0] sm:$0xff]  ;;  %v120_v21 = vld [vmem:[#allocation5 + $0xa8] sm:$0xff]  ;;  %v103_v22 = vld [vmem:[#allocation5 + $0x20] sm:$0xff] }
  0x14   :  { %390 = vmatpush.msra.mxu3 %v127_v7  ;;  %233 = vmatpush.msra.mxu1 %v127_v7  ;;  %v119_v23 = vld [vmem:[#allocation5 + $0xa0] sm:$0xff]  ;;  %v102_v24 = vld [vmem:[#allocation5 + $0x18] sm:$0xff]  ;;  %v101_v26 = vld [vmem:[#allocation5 + $0x10] sm:$0xff] }
  0x15   :  { %375 = vmatpush.msra.mxu2 %v110_v8  ;;  %139 = vmatpush.msra.mxu0 %v110_v8  ;;  %v118_v25 = vld [vmem:[#allocation5 + $0x98] sm:$0xff]  ;;  %v117_v27 = vld [vmem:[#allocation5 + $0x90] sm:$0xff]  ;;  %v100_v28 = vld [vmem:[#allocation5 + $0x8] sm:$0xff] }
  0x16   :  { %391 = vmatpush.msra.mxu3 %v126_v9  ;;  %234 = vmatpush.msra.mxu1 %v126_v9  ;;  %v116_v29 = vld [vmem:[#allocation5 + $0x88] sm:$0xff]  ;;  %v99_v30 = vld [vmem:[#allocation5] sm:$0xff]  ;;  %v73_v32 = vld [vmem:[#allocation2 + $0xd0] sm:$0xff] }
  0x17   :  { %376 = vmatpush.msra.mxu2 %v109_v10  ;;  %140 = vmatpush.msra.mxu0 %v109_v10  ;;  %v115_v31 = vld [vmem:[#allocation5 + $0x80] sm:$0xff]  ;;  %v74_v33 = vld [vmem:[#allocation2 + $0xd8] sm:$0xff]  ;;  %v48_v35 = vld [vmem:[#allocation2 + $0x8] sm:$0xff] }
  0x18   :  { %392 = vmatpush.msra.mxu3 %v125_v11  ;;  %235 = vmatpush.msra.mxu1 %v125_v11  ;;  %v47_v34 = vld [vmem:[#allocation2] sm:$0xff]  ;;  %v76_v37 = vld [vmem:[#allocation2 + $0xe8] sm:$0xff]  ;;  %v49_v38 = vld [vmem:[#allocation2 + $0x10] sm:$0xff] }
  0x19   :  { %377 = vmatpush.msra.mxu2 %v108_v12  ;;  %141 = vmatpush.msra.mxu0 %v108_v12  ;;  %v75_v36 = vld [vmem:[#allocation2 + $0xe0] sm:$0xff]  ;;  %v50_v39 = vld [vmem:[#allocation2 + $0x18] sm:$0xff]  ;;  %v77_v40 = vld [vmem:[#allocation2 + $0xf0] sm:$0xff] }
  0x1a   :  { %393 = vmatpush.msra.mxu3 %v124_v13  ;;  %236 = vmatpush.msra.mxu1 %v124_v13  ;;  %v78_v41 = vld [vmem:[#allocation2 + $0xf8] sm:$0xff]  ;;  %v51_v42 = vld [vmem:[#allocation2 + $0x20] sm:$0xff]  ;;  %v52_v43 = vld [vmem:[#allocation2 + $0x28] sm:$0xff] }
  0x1b   :  { %378 = vmatpush.msra.mxu2 %v107_v14  ;;  %142 = vmatpush.msra.mxu0 %v107_v14  ;;  %v79_v44 = vld [vmem:[#allocation2 + $0x100] sm:$0xff]  ;;  %v80_v45 = vld [vmem:[#allocation2 + $0x108] sm:$0xff]  ;;  %v53_v46 = vld [vmem:[#allocation2 + $0x30] sm:$0xff] }
  0x1c   :  { %394 = vmatpush.msra.mxu3 %v123_v15  ;;  %237 = vmatpush.msra.mxu1 %v123_v15  ;;  %v54_v47 = vld [vmem:[#allocation2 + $0x38] sm:$0xff]  ;;  %v81_v48 = vld [vmem:[#allocation2 + $0x110] sm:$0xff]  ;;  %v55_v50 = vld [vmem:[#allocation2 + $0x40] sm:$0xff] }
  0x1d   :  { %379 = vmatpush.msra.mxu2 %v106_v16  ;;  %143 = vmatpush.msra.mxu0 %v106_v16  ;;  %v82_v49 = vld [vmem:[#allocation2 + $0x118] sm:$0xff]  ;;  %v56_v51 = vld [vmem:[#allocation2 + $0x48] sm:$0xff]  ;;  %v83_v52 = vld [vmem:[#allocation2 + $0x120] sm:$0xff] }
  0x1e   :  { %395 = vmatpush.msra.mxu3 %v122_v17  ;;  %238 = vmatpush.msra.mxu1 %v122_v17  ;;  %v84_v53 = vld [vmem:[#allocation2 + $0x128] sm:$0xff]  ;;  %v57_v54 = vld [vmem:[#allocation2 + $0x50] sm:$0xff]  ;;  %v58_v55 = vld [vmem:[#allocation2 + $0x58] sm:$0xff] }
  0x1f   :  { %380 = vmatpush.msra.mxu2 %v105_v18  ;;  %144 = vmatpush.msra.mxu0 %v105_v18  ;;  %v85_v56 = vld [vmem:[#allocation2 + $0x130] sm:$0xff]  ;;  %v86_v57 = vld [vmem:[#allocation2 + $0x138] sm:$0xff]  ;;  %v59_v58 = vld [vmem:[#allocation2 + $0x60] sm:$0xff] }
  0x20   :  { %396 = vmatpush.msra.mxu3 %v121_v19  ;;  %239 = vmatpush.msra.mxu1 %v121_v19  ;;  %v60_v59 = vld [vmem:[#allocation2 + $0x68] sm:$0xff]  ;;  %v87_v60 = vld [vmem:[#allocation2 + $0x140] sm:$0xff]  ;;  %v61_v62 = vld [vmem:[#allocation2 + $0x70] sm:$0xff] }
  0x21   :  { %381 = vmatpush.msra.mxu2 %v104_v20  ;;  %145 = vmatpush.msra.mxu0 %v104_v20  ;;  %v88_v61 = vld [vmem:[#allocation2 + $0x148] sm:$0xff]  ;;  %v62_v63 = vld [vmem:[#allocation2 + $0x78] sm:$0xff]  ;;  %v89_v0 = vld [vmem:[#allocation2 + $0x150] sm:$0xff] }
  0x22   :  { %397 = vmatpush.msra.mxu3 %v120_v21  ;;  %240 = vmatpush.msra.mxu1 %v120_v21  ;;  %v90_v1 = vld [vmem:[#allocation2 + $0x158] sm:$0xff]  ;;  %v63_v2 = vld [vmem:[#allocation2 + $0x80] sm:$0xff]  ;;  %v64_v3 = vld [vmem:[#allocation2 + $0x88] sm:$0xff] }
  0x23   :  { %382 = vmatpush.msra.mxu2 %v103_v22  ;;  %146 = vmatpush.msra.mxu0 %v103_v22  ;;  %v91_v4 = vld [vmem:[#allocation2 + $0x160] sm:$0xff]  ;;  %v92_v5 = vld [vmem:[#allocation2 + $0x168] sm:$0xff]  ;;  %v65_v6 = vld [vmem:[#allocation2 + $0x90] sm:$0xff] }
  0x24   :  { %398 = vmatpush.msra.mxu3 %v119_v23  ;;  %241 = vmatpush.msra.mxu1 %v119_v23  ;;  %v66_v7 = vld [vmem:[#allocation2 + $0x98] sm:$0xff]  ;;  %v93_v8 = vld [vmem:[#allocation2 + $0x170] sm:$0xff]  ;;  %v67_v10 = vld [vmem:[#allocation2 + $0xa0] sm:$0xff] }
  0x25   :  { %383 = vmatpush.msra.mxu2 %v102_v24  ;;  %147 = vmatpush.msra.mxu0 %v102_v24  ;;  %v94_v9 = vld [vmem:[#allocation2 + $0x178] sm:$0xff]  ;;  %v68_v11 = vld [vmem:[#allocation2 + $0xa8] sm:$0xff]  ;;  %v95_v12 = vld [vmem:[#allocation2 + $0x180] sm:$0xff] }
  0x26   :  { %399 = vmatpush.msra.mxu3 %v118_v25  ;;  %242 = vmatpush.msra.mxu1 %v118_v25  ;;  %v96_v13 = vld [vmem:[#allocation2 + $0x188] sm:$0xff]  ;;  %v69_v14 = vld [vmem:[#allocation2 + $0xb0] sm:$0xff]  ;;  %v70_v15 = vld [vmem:[#allocation2 + $0xb8] sm:$0xff] }
  0x27   :  { %384 = vmatpush.msra.mxu2 %v101_v26  ;;  %148 = vmatpush.msra.mxu0 %v101_v26  ;;  %v97_v16 = vld [vmem:[#allocation2 + $0x190] sm:$0xff]  ;;  %v98_v17 = vld [vmem:[#allocation2 + $0x198] sm:$0xff]  ;;  %v71_v18 = vld [vmem:[#allocation2 + $0xc0] sm:$0xff] }
  0x28   :  { %400 = vmatpush.msra.mxu3 %v117_v27  ;;  %243 = vmatpush.msra.mxu1 %v117_v27  ;;  %v72_v19 = vld [vmem:[#allocation2 + $0xc8] sm:$0xff]  ;;  %v528_v20 = vld [vmem:[%s564_s2] ss:$0 sm:$0xff]  ;;  %s495_s2 = smov [#allocation7]  }
  0x29   :  { %385 = vmatpush.msra.mxu2 %v100_v28  ;;  %149 = vmatpush.msra.mxu0 %v100_v28  ;;  %s355_s26 = sshll.u32 %s495_s2, 4  ;;  %s356_s26 = int_to_ptr.vmem [resolvable:$true] %s355_s26 }
  0x2a   :  { %401 = vmatpush.msra.mxu3 %v116_v29  ;;  %244 = vmatpush.msra.mxu1 %v116_v29 }
  0x2b   :  { %386 = vmatpush.msra.mxu2 %v99_v30  ;;  %150 = vmatpush.msra.mxu0 %v99_v30 }
  0x2c   :  { %402 = vmatpush.msra.mxu3 %v115_v31  ;;  %190 = vmatmul.f32.vlgmr.msra.gmra.mxu2 %v73_v32 }
  0x2d   :  { %285 = vmatmul.f32.vlgmr.msra.gmra.mxu3 %v74_v33  ;;  %245 = vmatpush.msra.mxu1 %v115_v31 }
  0x2e   :  { %151 = vmatmul.f32.vlgmr.msra.gmra.mxu0 %v47_v34  ;;  %246 = vmatmul.f32.vlgmr.msra.gmra.mxu1 %v48_v35 }
  0x34   :  { %193 = vmatmul.f32.gmra.mxu2 %v75_v36 }
  0x35   :  { %288 = vmatmul.f32.gmra.mxu3 %v76_v37 }
  0x36   :  { %154 = vmatmul.f32.gmra.mxu0 %v49_v38  ;;  %249 = vmatmul.f32.gmra.mxu1 %v50_v39 }
  0x3c   :  { %196 = vmatmul.f32.gmra.mxu2 %v77_v40 }
  0x3d   :  { %291 = vmatmul.f32.gmra.mxu3 %v78_v41 }
  0x3e   :  { %157 = vmatmul.f32.gmra.mxu0 %v51_v42  ;;  %252 = vmatmul.f32.gmra.mxu1 %v52_v43 }
  0x44   :  { %199 = vmatmul.f32.gmra.mxu2 %v79_v44 }
  0x45   :  { %294 = vmatmul.f32.gmra.mxu3 %v80_v45 }
  0x46   :  { %160 = vmatmul.f32.gmra.mxu0 %v53_v46  ;;  %255 = vmatmul.f32.gmra.mxu1 %v54_v47 }
  0x4c   :  { %202 = vmatmul.f32.gmra.mxu2 %v81_v48 }
  0x4d   :  { %297 = vmatmul.f32.gmra.mxu3 %v82_v49 }
  0x4e   :  { %163 = vmatmul.f32.gmra.mxu0 %v55_v50  ;;  %258 = vmatmul.f32.gmra.mxu1 %v56_v51 }
  0x54   :  { %205 = vmatmul.f32.gmra.mxu2 %v83_v52 }
  0x55   :  { %300 = vmatmul.f32.gmra.mxu3 %v84_v53 }
  0x56   :  { %166 = vmatmul.f32.gmra.mxu0 %v57_v54  ;;  %261 = vmatmul.f32.gmra.mxu1 %v58_v55 }
  0x5c   :  { %208 = vmatmul.f32.gmra.mxu2 %v85_v56 }
  0x5d   :  { %303 = vmatmul.f32.gmra.mxu3 %v86_v57 }
  0x5e   :  { %169 = vmatmul.f32.gmra.mxu0 %v59_v58  ;;  %264 = vmatmul.f32.gmra.mxu1 %v60_v59 }
  0x64   :  { %211 = vmatmul.f32.gmra.mxu2 %v87_v60 }
  0x65   :  { %306 = vmatmul.f32.gmra.mxu3 %v88_v61 }
  0x66   :  { %172 = vmatmul.f32.gmra.mxu0 %v61_v62  ;;  %267 = vmatmul.f32.gmra.mxu1 %v62_v63 }
  0x6c   :  { %214 = vmatmul.f32.gmra.mxu2 %v89_v0 }
  0x6d   :  { %309 = vmatmul.f32.gmra.mxu3 %v90_v1 }
  0x6e   :  { %175 = vmatmul.f32.gmra.mxu0 %v63_v2  ;;  %270 = vmatmul.f32.gmra.mxu1 %v64_v3 }
  0x74   :  { %217 = vmatmul.f32.gmra.mxu2 %v91_v4 }
  0x75   :  { %312 = vmatmul.f32.gmra.mxu3 %v92_v5 }
  0x76   :  { %178 = vmatmul.f32.gmra.mxu0 %v65_v6  ;;  %273 = vmatmul.f32.gmra.mxu1 %v66_v7 }
  0x7c   :  { %220 = vmatmul.f32.gmra.mxu2 %v93_v8 }
  0x7d   :  { %315 = vmatmul.f32.gmra.mxu3 %v94_v9 }
  0x7e   :  { %181 = vmatmul.f32.gmra.mxu0 %v67_v10  ;;  %276 = vmatmul.f32.gmra.mxu1 %v68_v11 }
  0x84   :  { %223 = vmatmul.f32.gmra.mxu2 %v95_v12 }
  0x85   :  { %318 = vmatmul.f32.gmra.mxu3 %v96_v13 }
  0x86   :  { %184 = vmatmul.f32.gmra.mxu0 %v69_v14  ;;  %279 = vmatmul.f32.gmra.mxu1 %v70_v15 }
  0x8c   :  { %226 = vmatmul.f32.gmra.mxu2 %v97_v16 }
  0x8d   :  { %321 = vmatmul.f32.gmra.mxu3 %v98_v17 }
  0x8e   :  { %187 = vmatmul.f32.gmra.mxu0 %v71_v18  ;;  %282 = vmatmul.f32.gmra.mxu1 %v72_v19 }
  0xab   :  { %v152_v21 = vpop.f32.mrf.mxu0  ;;  %v247_v22 = vpop.f32.mrf.mxu1 }
  0xac   :  { %v153_v23 = vadd.f32 %v528_v20, %v152_v21 }
  0xae   :  { %v248_v24 = vadd.f32 %v247_v22, %v153_v23 }
  0xaf   :  { %v191_v25 = vpop.f32.mrf.mxu2 }
  0xb0   :  { %v286_v26 = vpop.f32.mrf.mxu3  ;;  %v192_v27 = vadd.f32 %v528_v20, %v191_v25  ;;  %325 = vst [vmem:[#allocation7] sm:$0xff] %v248_v24 }
  0xb2   :  { %v287_v28 = vadd.f32 %v286_v26, %v192_v27 }
  0xb3   :  { %v155_v29 = vpop.f32.mrf.mxu0  ;;  %v250_v30 = vpop.f32.mrf.mxu1 }
  0xb4   :  { %338 = vst [vmem:[#allocation7 + $0x68] sm:$0xff] %v287_v28  ;;  %v156_v31 = vadd.f32 %v528_v20, %v155_v29 }
  0xb6   :  { %v251_v32 = vadd.f32 %v250_v30, %v156_v31 }
  0xb7   :  { %v194_v33 = vpop.f32.mrf.mxu2 }
  0xb8   :  { %v289_v34 = vpop.f32.mrf.mxu3  ;;  %v195_v35 = vadd.f32 %v528_v20, %v194_v33  ;;  %326 = vst [vmem:[#allocation7 + $0x8] sm:$0xff] %v251_v32 }
  0xba   :  { %v290_v36 = vadd.f32 %v289_v34, %v195_v35 }
  0xbb   :  { %v158_v37 = vpop.f32.mrf.mxu0  ;;  %v253_v38 = vpop.f32.mrf.mxu1 }
  0xbc   :  { %339 = vst [vmem:[#allocation7 + $0x70] sm:$0xff] %v290_v36  ;;  %v159_v39 = vadd.f32 %v528_v20, %v158_v37 }
  0xbe   :  { %v254_v40 = vadd.f32 %v253_v38, %v159_v39 }
  0xbf   :  { %v197_v41 = vpop.f32.mrf.mxu2 }
  0xc0   :  { %v292_v42 = vpop.f32.mrf.mxu3  ;;  %v198_v43 = vadd.f32 %v528_v20, %v197_v41  ;;  %327 = vst [vmem:[#allocation7 + $0x10] sm:$0xff] %v254_v40 }
  0xc2   :  { %v293_v44 = vadd.f32 %v292_v42, %v198_v43 }
  0xc3   :  { %v161_v45 = vpop.f32.mrf.mxu0  ;;  %v256_v46 = vpop.f32.mrf.mxu1 }
  0xc4   :  { %340 = vst [vmem:[#allocation7 + $0x78] sm:$0xff] %v293_v44  ;;  %v162_v47 = vadd.f32 %v528_v20, %v161_v45 }
  0xc6   :  { %v257_v48 = vadd.f32 %v256_v46, %v162_v47 }
  0xc7   :  { %v200_v49 = vpop.f32.mrf.mxu2 }
  0xc8   :  { %v295_v50 = vpop.f32.mrf.mxu3  ;;  %v201_v51 = vadd.f32 %v528_v20, %v200_v49  ;;  %328 = vst [vmem:[#allocation7 + $0x18] sm:$0xff] %v257_v48 }
  0xca   :  { %v296_v52 = vadd.f32 %v295_v50, %v201_v51 }
  0xcb   :  { %v164_v53 = vpop.f32.mrf.mxu0  ;;  %v259_v54 = vpop.f32.mrf.mxu1 }
  0xcc   :  { %341 = vst [vmem:[#allocation7 + $0x80] sm:$0xff] %v296_v52  ;;  %v165_v55 = vadd.f32 %v528_v20, %v164_v53 }
  0xce   :  { %v260_v56 = vadd.f32 %v259_v54, %v165_v55 }
  0xcf   :  { %v203_v57 = vpop.f32.mrf.mxu2 }
  0xd0   :  { %v298_v58 = vpop.f32.mrf.mxu3  ;;  %v204_v59 = vadd.f32 %v528_v20, %v203_v57  ;;  %329 = vst [vmem:[#allocation7 + $0x20] sm:$0xff] %v260_v56 }
  0xd2   :  { %v299_v60 = vadd.f32 %v298_v58, %v204_v59 }
  0xd3   :  { %v167_v61 = vpop.f32.mrf.mxu0  ;;  %v262_v62 = vpop.f32.mrf.mxu1 }
  0xd4   :  { %342 = vst [vmem:[#allocation7 + $0x88] sm:$0xff] %v299_v60  ;;  %v168_v63 = vadd.f32 %v528_v20, %v167_v61 }
  0xd6   :  { %v263_v0 = vadd.f32 %v262_v62, %v168_v63 }
  0xd7   :  { %v206_v1 = vpop.f32.mrf.mxu2 }
  0xd8   :  { %v301_v2 = vpop.f32.mrf.mxu3  ;;  %v207_v3 = vadd.f32 %v528_v20, %v206_v1  ;;  %330 = vst [vmem:[#allocation7 + $0x28] sm:$0xff] %v263_v0 }
  0xda   :  { %v302_v4 = vadd.f32 %v301_v2, %v207_v3 }
  0xdb   :  { %v170_v5 = vpop.f32.mrf.mxu0  ;;  %v265_v6 = vpop.f32.mrf.mxu1 }
  0xdc   :  { %343 = vst [vmem:[#allocation7 + $0x90] sm:$0xff] %v302_v4  ;;  %v171_v7 = vadd.f32 %v528_v20, %v170_v5 }
  0xde   :  { %v266_v8 = vadd.f32 %v265_v6, %v171_v7 }
  0xdf   :  { %v209_v9 = vpop.f32.mrf.mxu2 }
  0xe0   :  { %v304_v10 = vpop.f32.mrf.mxu3  ;;  %v210_v11 = vadd.f32 %v528_v20, %v209_v9  ;;  %331 = vst [vmem:[#allocation7 + $0x30] sm:$0xff] %v266_v8 }
  0xe2   :  { %v305_v12 = vadd.f32 %v304_v10, %v210_v11 }
  0xe3   :  { %v173_v13 = vpop.f32.mrf.mxu0  ;;  %v268_v14 = vpop.f32.mrf.mxu1 }
  0xe4   :  { %344 = vst [vmem:[#allocation7 + $0x98] sm:$0xff] %v305_v12  ;;  %v174_v15 = vadd.f32 %v528_v20, %v173_v13 }
  0xe6   :  { %v269_v16 = vadd.f32 %v268_v14, %v174_v15 }
  0xe7   :  { %v212_v17 = vpop.f32.mrf.mxu2 }
  0xe8   :  { %v307_v18 = vpop.f32.mrf.mxu3  ;;  %v213_v19 = vadd.f32 %v528_v20, %v212_v17  ;;  %332 = vst [vmem:[#allocation7 + $0x38] sm:$0xff] %v269_v16 }
  0xea   :  { %v308_v21 = vadd.f32 %v307_v18, %v213_v19 }
  0xeb   :  { %v176_v22 = vpop.f32.mrf.mxu0  ;;  %v271_v23 = vpop.f32.mrf.mxu1 }
  0xec   :  { %345 = vst [vmem:[#allocation7 + $0xa0] sm:$0xff] %v308_v21  ;;  %v177_v24 = vadd.f32 %v528_v20, %v176_v22 }
  0xee   :  { %v272_v25 = vadd.f32 %v271_v23, %v177_v24 }
  0xef   :  { %v215_v26 = vpop.f32.mrf.mxu2 }
  0xf0   :  { %v310_v27 = vpop.f32.mrf.mxu3  ;;  %v216_v28 = vadd.f32 %v528_v20, %v215_v26  ;;  %333 = vst [vmem:[#allocation7 + $0x40] sm:$0xff] %v272_v25 }
  0xf2   :  { %v311_v29 = vadd.f32 %v310_v27, %v216_v28 }
  0xf3   :  { %v179_v30 = vpop.f32.mrf.mxu0  ;;  %v274_v31 = vpop.f32.mrf.mxu1 }
  0xf4   :  { %346 = vst [vmem:[#allocation7 + $0xa8] sm:$0xff] %v311_v29  ;;  %v180_v32 = vadd.f32 %v528_v20, %v179_v30 }
  0xf6   :  { %v275_v33 = vadd.f32 %v274_v31, %v180_v32 }
  0xf7   :  { %v218_v34 = vpop.f32.mrf.mxu2 }
  0xf8   :  { %v313_v35 = vpop.f32.mrf.mxu3  ;;  %v219_v36 = vadd.f32 %v528_v20, %v218_v34  ;;  %334 = vst [vmem:[#allocation7 + $0x48] sm:$0xff] %v275_v33 }
  0xfa   :  { %v314_v37 = vadd.f32 %v313_v35, %v219_v36 }
  0xfb   :  { %v182_v38 = vpop.f32.mrf.mxu0  ;;  %v277_v39 = vpop.f32.mrf.mxu1 }
  0xfc   :  { %347 = vst [vmem:[#allocation7 + $0xb0] sm:$0xff] %v314_v37  ;;  %v183_v40 = vadd.f32 %v528_v20, %v182_v38 }
  0xfe   :  { %v278_v41 = vadd.f32 %v277_v39, %v183_v40 }
  0xff   :  { %v221_v42 = vpop.f32.mrf.mxu2 }
 0x100   :  { %v316_v43 = vpop.f32.mrf.mxu3  ;;  %v222_v44 = vadd.f32 %v528_v20, %v221_v42  ;;  %335 = vst [vmem:[#allocation7 + $0x50] sm:$0xff] %v278_v41 }
 0x102   :  { %v317_v45 = vadd.f32 %v316_v43, %v222_v44 }
 0x103   :  { %v185_v46 = vpop.f32.mrf.mxu0  ;;  %v280_v47 = vpop.f32.mrf.mxu1 }
 0x104   :  { %348 = vst [vmem:[#allocation7 + $0xb8] sm:$0xff] %v317_v45  ;;  %v186_v48 = vadd.f32 %v528_v20, %v185_v46 }
 0x106   :  { %v281_v49 = vadd.f32 %v280_v47, %v186_v48 }
 0x107   :  { %v224_v50 = vpop.f32.mrf.mxu2 }
 0x108   :  { %v319_v51 = vpop.f32.mrf.mxu3  ;;  %v225_v52 = vadd.f32 %v528_v20, %v224_v50  ;;  %336 = vst [vmem:[#allocation7 + $0x58] sm:$0xff] %v281_v49 }
 0x10a   :  { %v320_v53 = vadd.f32 %v319_v51, %v225_v52 }
 0x10b   :  { %v188_v54 = vpop.f32.mrf.mxu0  ;;  %v283_v55 = vpop.f32.mrf.mxu1 }
 0x10c   :  { %349 = vst [vmem:[#allocation7 + $0xc0] sm:$0xff] %v320_v53  ;;  %v189_v56 = vadd.f32 %v528_v20, %v188_v54 }
 0x10e   :  { %v284_v57 = vadd.f32 %v283_v55, %v189_v56 }
 0x10f   :  { %v227_v58 = vpop.f32.mrf.mxu2 }
 0x110   :  { %v322_v59 = vpop.f32.mrf.mxu3  ;;  %v228_v60 = vadd.f32 %v528_v20, %v227_v58  ;;  %337 = vst [vmem:[#allocation7 + $0x60] sm:$0xff] %v284_v57 }
 0x112   :  { %v323_v61 = vadd.f32 %v322_v59, %v228_v60 }
 0x114   :  { %350 = vst [vmem:[#allocation7 + $0xc8] sm:$0xff] %v323_v61 }
 0x115   :  { %363 = dma.vmem_to_hbm [thread:$0]  %s356_s26, 3328, %s358_s29, [#allocation4], %s493_s24, %s493_s24, %s494_s25  }
 0x116   :  { %487 = dma.done.wait [#allocation4], 3328  }
 0x117   :  { %488 = vsyncadd [#allocation4], 4294963968 }
 0x118   :  { %368 = vsyncpa [#allocation3], 1 }
 0x119   :  { %369 = vsyncpa [#allocation6], 1 }
 0x11a   :  { %370 = vsyncpa [#allocation4], 1 }

</bundles_post_ra>
